<compile_context>
chip_gen: v7x
topology: tpu7x:2x2x1
jax: 0.10.0
libtpu: 0.0.40
codegen_flags: <defaults>
</compile_context>

<pallas_src>
import math

import jax
import jax.numpy as jnp
from jax.experimental import pallas as pl
from jax.experimental.pallas import tpu as pltpu


def _round_up(a, b):
    return -(-a // b) * b


def _gelu_exact(x):
    """Exact (erf-based) GELU matching torch.nn.GELU() (approximate='none').

    erf via Abramowitz & Stegun 7.1.26 (|err| < 1.5e-7).  The divide uses
    pl.reciprocal(approx=True) (EUP slot); exp is also EUP; the rest is cheap
    VPU filler under the HBM-bound roof.
    """
    z = x * (1.0 / math.sqrt(2.0))
    az = jnp.abs(z)
    t = pl.reciprocal(1.0 + 0.3275911 * az, approx=True)
    poly = t * (0.254829592 + t * (-0.284496736 + t * (1.421413741
             + t * (-1.453152027 + t * 1.061405429))))
    erf_abs = 1.0 - poly * jnp.exp(-az * az)
    erf_z = jnp.where(z >= 0, erf_abs, -erf_abs)
    return 0.5 * x * (1.0 + erf_z)


def _make_conv_gelu_kernel(*, off_list, m_tile):
    """Kernel factory: closes over the static tap-offset list and tile size."""

    def kernel(x_ref, w_ref, b_ref, o_ref):
        # x_ref: [1, 1, rows, tile_in]  phase-packed input tile (+ halo), bf16/f32
        # w_ref: [c_out, n_shift*rows]  stacked per-shift weight matrix
        # b_ref: [c_out, 1]             bias column (f32)
        # o_ref: [1, c_out, m_tile]     lane-dense output tile (f32)
        xb = x_ref[0, 0]                                   # [rows, tile_in]
        # One lane-shifted view per distinct tap offset.  Every piece is a
        # whole number of sublane tiles tall, and the tiny static lane shifts
        # stay inside the halo (aligned over-read), so no strided reloads of
        # misaligned sub-blocks are needed.
        pieces = [xb[:, off:off + m_tile] for off in off_list]
        patch = pieces[0] if len(pieces) == 1 else jnp.concatenate(pieces, axis=0)
        # Single MXU contraction over K = n_shift * rows; f32 accumulation.
        acc = jnp.dot(w_ref[...], patch, preferred_element_type=jnp.float32)
        acc = acc + b_ref[...]                             # broadcast over lanes
        o_ref[0] = _gelu_exact(acc).astype(o_ref.dtype)

    return kernel


def down_conv_layer_forward(x, weight, bias, *, stride=1, padding=1,
                            lane_tile=512, compute_dtype=jnp.bfloat16):
    """Forward of DownConvLayer: GELU(Conv2d(x)).  x is NCHW [N, C_in, H, W]."""
    n, c_in, h, w = x.shape
    c_out, c_in_w, kh, kw = weight.shape
    assert c_in == c_in_w
    s, p = int(stride), int(padding)

    h_out = (h + 2 * p - kh) // s + 1
    w_out = (w + 2 * p - kw) // s + 1
    qi_max = (kh - 1) // s
    qj_max = (kw - 1) // s

    # ---- layout constants --------------------------------------------------
    # Pad channels so the phase-packed row count (s*s*c_pad) is a whole number
    # of sublane tiles (8 rows f32, 16 rows bf16) -> tile-aligned pieces.
    sub = 16 if jnp.dtype(compute_dtype).itemsize == 2 else 8
    c_unit = sub // math.gcd(s * s, sub)
    c_pad = _round_up(c_in, c_unit)
    rows = s * s * c_pad

    pw_ = max(w_out + qj_max, -(-(w + p) // s))    # phase-grid width
    m_flat = h_out * pw_                           # real flattened output cols

    # Output lane axis rounded up to a 128 multiple, split into lane tiles.
    m_pad0 = _round_up(m_flat, 128)
    target = _round_up(max(128, lane_tile), 128)
    n_tiles = max(1, -(-m_pad0 // target))
    m_tile = _round_up(-(-m_pad0 // n_tiles), 128)
    m_pad = n_tiles * m_tile

    # Distinct tap lane offsets (qi, qj) and the read-side halo they need.
    shifts = [(qi, qj) for qi in range(qi_max + 1) for qj in range(qj_max + 1)]
    off_list = [qi * pw_ + qj for qi, qj in shifts]
    max_off = off_list[-1]
    tile_in = m_tile + max_off                     # per-tile input lanes (halo)

    # Phase-grid height: tall enough for the (padded) image AND so every tap
    # slice of the last lane tile stays in bounds (extra rows are zeros).
    ph_ = max(-(-(h + p) // s), -(-(m_pad + max_off) // pw_))
    l_flat = ph_ * pw_
    pad_h, pad_w = s * ph_, s * pw_

    # ---- wrapper glue (input-sized, done once by XLA) -----------------------
    x_pad = jnp.pad(x, ((0, 0), (0, c_pad - c_in),
                        (p, pad_h - p - h), (p, pad_w - p - w)))
    # space-to-depth: [N,Cp,PH,s,PW,s] -> [N, s(ri), s(rj), Cp, PH, PW]
    #                 -> [N, s*s*Cp, PH*PW];  row = (ri*s+rj)*Cp + ci.
    x_ph = (x_pad.reshape(n, c_pad, ph_, s, pw_, s)
                 .transpose(0, 3, 5, 1, 2, 4)
                 .reshape(n, rows, l_flat)
                 .astype(compute_dtype))
    # Pre-tiled, halo-overlapped view of the lane axis (halo duplication in
    # HBM is only max_off/m_tile).
    x_tiles = jnp.stack(
        [x_ph[:, :, t * m_tile: t * m_tile + tile_in] for t in range(n_tiles)],
        axis=1)                                    # [N, T, rows, tile_in]

    # Stacked weight [c_out, n_shift*rows]: column (o, phase, ci) holds
    # weight[:, ci, qi*s+ri, qj*s+rj] for shift o=(qi,qj), phase (ri,rj); zero
    # where that tap / padded channel does not exist (free on the idle MXU).
    w_stack = jnp.zeros((c_out, len(shifts), s * s, c_pad), jnp.float32)
    for o, (qi, qj) in enumerate(shifts):
        for ri in range(s):
            for rj in range(s):
                i, j = qi * s + ri, qj * s + rj
                if i < kh and j < kw:
                    w_stack = w_stack.at[:, o, ri * s + rj, :c_in].set(
                        weight[:, :, i, j].astype(jnp.float32))
    k_stack = len(shifts) * rows
    w_stack = w_stack.reshape(c_out, k_stack).astype(compute_dtype)
    bias_col = bias.reshape(c_out, 1).astype(jnp.float32)

    kernel = _make_conv_gelu_kernel(off_list=off_list, m_tile=m_tile)

    in_itemsize = jnp.dtype(compute_dtype).itemsize
    step_bytes = (2 * (rows * tile_in * in_itemsize + c_out * m_tile * 4)
                  + c_out * k_stack * in_itemsize + 4 * c_out)
    vmem_limit = int(min(64 * 1024 * 1024, max(32 * 1024 * 1024, 8 * step_bytes)))

    cost = pl.CostEstimate(
        flops=2 * n * n_tiles * c_out * k_stack * m_tile,
        transcendentals=2 * n * c_out * m_pad,      # exp + approx reciprocal
        bytes_accessed=(x_tiles.size * in_itemsize + w_stack.size * in_itemsize
                        + bias_col.size * 4 + n * c_out * m_pad * 4),
    )

    # Note: for tiny N * n_tiles one could additionally fold the batch into a
    # single block to amortize the ~0.35us/step overhead; at realistic sizes
    # the (N, tiles) grid already provides plenty of pipelined steps.
    out_flat = pl.pallas_call(
        kernel,
        out_shape=jax.ShapeDtypeStruct((n, c_out, m_pad), jnp.float32),
        grid=(n, n_tiles),
        in_specs=[
            pl.BlockSpec((1, 1, rows, tile_in), lambda b, t: (b, t, 0, 0)),
            pl.BlockSpec((c_out, k_stack), lambda b, t: (0, 0)),
            pl.BlockSpec((c_out, 1), lambda b, t: (0, 0)),
        ],
        out_specs=pl.BlockSpec((1, c_out, m_tile), lambda b, t: (b, 0, t)),
        compiler_params=pltpu.CompilerParams(
            dimension_semantics=("parallel", "parallel"),
            vmem_limit_bytes=vmem_limit,
        ),
        cost_estimate=cost,
    )(x_tiles, w_stack, bias_col)

    # [N,C_out,m_pad] -> drop lane padding -> [N,C_out,H_out,PW] -> drop the
    # right-edge junk columns.  Already NCHW; no transpose needed.
    return out_flat[:, :, :m_flat].reshape(n, c_out, h_out, pw_)[:, :, :, :w_out]


if __name__ == "__main__":
    in_channels, out_channels = 4, 8
    kernel_size, stride, padding = 3, 2, 1          # stride-2 downsampling conv

    key = jax.random.PRNGKey(0)
    kx, k_w, k_b = jax.random.split(key, 3)

    fan_in = in_channels * kernel_size * kernel_size
    bound = 1.0 / math.sqrt(fan_in)
    weight = jax.random.uniform(
        k_w, (out_channels, in_channels, kernel_size, kernel_size),
        minval=-bound, maxval=bound, dtype=jnp.float32)
    bias = jax.random.uniform(
        k_b, (out_channels,), minval=-bound, maxval=bound, dtype=jnp.float32)

    x = jax.random.normal(kx, (2, in_channels, 16, 16), dtype=jnp.float32)

    out = down_conv_layer_forward(x, weight, bias, stride=stride, padding=padding)
    out = jax.block_until_ready(out)

    # Reference: XLA conv (nn.Conv2d semantics) + exact GELU (nn.GELU default).
    ref_conv = jax.lax.conv_general_dilated(
        x, weight, window_strides=(stride, stride),
        padding=((padding, padding), (padding, padding)),
        dimension_numbers=("NCHW", "OIHW", "NCHW"),
        precision=jax.lax.Precision.HIGHEST) + bias.reshape(1, -1, 1, 1)
    ref = jax.nn.gelu(ref_conv, approximate=False)

    h_out = (16 + 2 * padding - kernel_size) // stride + 1
    assert out.shape == (2, out_channels, h_out, h_out), out.shape
    # bf16 MXU inputs (f32 accumulation) + approx reciprocal in the erf
    # polynomial -> loosened tolerance vs. a pure-f32 pipeline.
    max_err = float(jnp.max(jnp.abs(out - ref)))
    assert jnp.allclose(out, ref, atol=3e-2, rtol=3e-2), max_err

    print("KERNEL_OK")
</pallas_src>

<mosaic_0001>
module attributes {stable_mosaic.version = 11 : i64} {
  func.func @kernel(%arg0: i32, %arg1: i32, %arg2: memref<1x1x16x138xbf16, #tpu.memory_space<vmem>>, %arg3: memref<8x64xbf16, #tpu.memory_space<vmem>>, %arg4: memref<8x1xf32, #tpu.memory_space<vmem>>, %arg5: memref<1x8x128xf32, #tpu.memory_space<vmem>>) attributes {dimension_semantics = [#tpu.dimension_semantics<parallel>, #tpu.dimension_semantics<parallel>], iteration_bounds = array<i64: 2, 1>, scalar_prefetch = 0 : i64, scratch_operands = 0 : i64, tpu.core_type = #tpu.core_type<tc>, window_params = [{transform_indices = @transform_0, window_bounds = array<i64: 1, 1, 16, 138>}, {pipeline_mode = #tpu.pipeline_mode<synchronous>, transform_indices = @transform_1, window_bounds = array<i64: 8, 64>}, {pipeline_mode = #tpu.pipeline_mode<synchronous>, transform_indices = @transform_2, window_bounds = array<i64: 8, 1>}, {transform_indices = @transform_3, window_bounds = array<i64: 1, 8, 128>}]} {
    %c0 = arith.constant 0 : index
    %c0_0 = arith.constant 0 : index
    %c0_1 = arith.constant 0 : index
    %c0_2 = arith.constant 0 : index
    %0 = vector.load %arg2[%c0, %c0_0, %c0_1, %c0_2] : memref<1x1x16x138xbf16, #tpu.memory_space<vmem>>, vector<1x1x16x138xbf16>
    %1 = vector.shape_cast %0 : vector<1x1x16x138xbf16> to vector<16x138xbf16>
    %2 = vector.extract_strided_slice %1 {offsets = [0, 0], sizes = [16, 128], strides = [1, 1]} : vector<16x138xbf16> to vector<16x128xbf16>
    %3 = vector.extract_strided_slice %1 {offsets = [0, 1], sizes = [16, 128], strides = [1, 1]} : vector<16x138xbf16> to vector<16x128xbf16>
    %4 = vector.extract_strided_slice %1 {offsets = [0, 9], sizes = [16, 128], strides = [1, 1]} : vector<16x138xbf16> to vector<16x128xbf16>
    %5 = vector.extract_strided_slice %1 {offsets = [0, 10], sizes = [16, 128], strides = [1, 1]} : vector<16x138xbf16> to vector<16x128xbf16>
    %6 = tpu.concatenate %2, %3, %4, %5 in 0 : vector<16x128xbf16>, vector<16x128xbf16>, vector<16x128xbf16>, vector<16x128xbf16> -> vector<64x128xbf16>
    %c0_3 = arith.constant 0 : index
    %c0_4 = arith.constant 0 : index
    %7 = vector.load %arg3[%c0_3, %c0_4] : memref<8x64xbf16, #tpu.memory_space<vmem>>, vector<8x64xbf16>
    %cst = arith.constant dense<0.000000e+00> : vector<8x128xf32>
    %8 = tpu.matmul %7, %6, %cst {dimension_numbers = #tpu.dot_dimension_numbers<[1], [0], [0], [1], [0, 0, 1, 1], [], []>} : vector<8x64xbf16>, vector<64x128xbf16>, vector<8x128xf32> -> vector<8x128xf32>
    %c0_5 = arith.constant 0 : index
    %c0_6 = arith.constant 0 : index
    %9 = vector.load %arg4[%c0_5, %c0_6] : memref<8x1xf32, #tpu.memory_space<vmem>>, vector<8x1xf32>
    %10 = vector.broadcast %9 : vector<8x1xf32> to vector<8x128xf32>
    %11 = arith.addf %8, %10 : vector<8x128xf32>
    %cst_7 = arith.constant 0.707106769 : f32
    %12 = vector.broadcast %cst_7 : f32 to vector<8x128xf32>
    %13 = arith.mulf %11, %12 : vector<8x128xf32>
    %14 = math.absf %13 : vector<8x128xf32>
    %cst_8 = arith.constant 0.327591091 : f32
    %15 = vector.broadcast %cst_8 : f32 to vector<8x128xf32>
    %16 = arith.mulf %15, %14 : vector<8x128xf32>
    %cst_9 = arith.constant 1.000000e+00 : f32
    %17 = vector.broadcast %cst_9 : f32 to vector<8x128xf32>
    %18 = arith.addf %17, %16 : vector<8x128xf32>
    %19 = tpu.reciprocal %18 {approx = true} : vector<8x128xf32> -> vector<8x128xf32>
    %cst_10 = arith.constant 1.06140542 : f32
    %20 = vector.broadcast %cst_10 : f32 to vector<8x128xf32>
    %21 = arith.mulf %19, %20 : vector<8x128xf32>
    %cst_11 = arith.constant -1.45315206 : f32
    %22 = vector.broadcast %cst_11 : f32 to vector<8x128xf32>
    %23 = arith.addf %22, %21 : vector<8x128xf32>
    %24 = arith.mulf %19, %23 : vector<8x128xf32>
    %cst_12 = arith.constant 1.42141378 : f32
    %25 = vector.broadcast %cst_12 : f32 to vector<8x128xf32>
    %26 = arith.addf %25, %24 : vector<8x128xf32>
    %27 = arith.mulf %19, %26 : vector<8x128xf32>
    %cst_13 = arith.constant -0.284496725 : f32
    %28 = vector.broadcast %cst_13 : f32 to vector<8x128xf32>
    %29 = arith.addf %28, %27 : vector<8x128xf32>
    %30 = arith.mulf %19, %29 : vector<8x128xf32>
    %cst_14 = arith.constant 0.254829586 : f32
    %31 = vector.broadcast %cst_14 : f32 to vector<8x128xf32>
    %32 = arith.addf %31, %30 : vector<8x128xf32>
    %33 = arith.mulf %19, %32 : vector<8x128xf32>
    %cst_15 = arith.constant 0.000000e+00 : f32
    %34 = vector.broadcast %cst_15 : f32 to vector<8x128xf32>
    %35 = arith.subf %34, %14 : vector<8x128xf32>
    %36 = arith.mulf %35, %14 : vector<8x128xf32>
    %37 = math.exp %36 : vector<8x128xf32>
    %38 = arith.mulf %33, %37 : vector<8x128xf32>
    %cst_16 = arith.constant 1.000000e+00 : f32
    %39 = vector.broadcast %cst_16 : f32 to vector<8x128xf32>
    %40 = arith.subf %39, %38 : vector<8x128xf32>
    %cst_17 = arith.constant 0.000000e+00 : f32
    %41 = vector.broadcast %cst_17 : f32 to vector<8x128xf32>
    %42 = arith.cmpf oge, %13, %41 : vector<8x128xf32>
    %cst_18 = arith.constant 0.000000e+00 : f32
    %43 = vector.broadcast %cst_18 : f32 to vector<8x128xf32>
    %44 = arith.subf %43, %40 : vector<8x128xf32>
    %45 = arith.select %42, %40, %44 : vector<8x128xi1>, vector<8x128xf32>
    %cst_19 = arith.constant 5.000000e-01 : f32
    %46 = vector.broadcast %cst_19 : f32 to vector<8x128xf32>
    %47 = arith.mulf %46, %11 : vector<8x128xf32>
    %cst_20 = arith.constant 1.000000e+00 : f32
    %48 = vector.broadcast %cst_20 : f32 to vector<8x128xf32>
    %49 = arith.addf %48, %45 : vector<8x128xf32>
    %50 = arith.mulf %47, %49 : vector<8x128xf32>
    %c0_21 = arith.constant 0 : index
    %c0_22 = arith.constant 0 : index
    %c0_23 = arith.constant 0 : index
    %51 = vector.load %arg5[%c0_21, %c0_22, %c0_23] : memref<1x8x128xf32, #tpu.memory_space<vmem>>, vector<1x8x128xf32>
    %52 = vector.shape_cast %51 : vector<1x8x128xf32> to vector<8x128xf32>
    %53 = vector.shape_cast %50 : vector<8x128xf32> to vector<1x8x128xf32>
    tpu.vector_store %arg5[%c0_21, %c0_22, %c0_23], %53 {strides = array<i32>} : memref<1x8x128xf32, #tpu.memory_space<vmem>>, vector<1x8x128xf32>,
    return
  }
  func.func @transform_0(%arg0: i32, %arg1: i32) -> (i32, i32, i32, i32) {
    %c0_i32 = arith.constant 0 : i32
    %c0_i32_0 = arith.constant 0 : i32
    %c0_i32_1 = arith.constant 0 : i32
    return %arg0, %arg1, %c0_i32, %c0_i32_0 : i32, i32, i32, i32
  }
  func.func @transform_1(%arg0: i32, %arg1: i32) -> (i32, i32) {
    %c0_i32 = arith.constant 0 : i32
    %c0_i32_0 = arith.constant 0 : i32
    %c0_i32_1 = arith.constant 0 : i32
    return %c0_i32, %c0_i32_0 : i32, i32
  }
  func.func @transform_2(%arg0: i32, %arg1: i32) -> (i32, i32) {
    %c0_i32 = arith.constant 0 : i32
    %c0_i32_0 = arith.constant 0 : i32
    %c0_i32_1 = arith.constant 0 : i32
    return %c0_i32, %c0_i32_0 : i32, i32
  }
  func.func @transform_3(%arg0: i32, %arg1: i32) -> (i32, i32, i32) {
    %c0_i32 = arith.constant 0 : i32
    %c0_i32_0 = arith.constant 0 : i32
    return %arg0, %c0_i32, %arg1 : i32, i32, i32
  }
}

</mosaic_0001>

<bundles_post_ra>
// kernel: tpu_custom_call.1
= control target key start
LH: loop header
LB: loop body
LE: loop exit
PB: predicated region body
PF: predicated region fallthrough
CT: control target
= control target key end

     0   :  { %8 = vsyncpa [#allocation3], 0  ;;  %s852_s0 = inlined_call_operand.hbm [shape: bf16[2,1,16,138], index: 0, kind: input, shape index: {}]   ;;  %s853_s1 = inlined_call_operand.vmem [shape: bf16[8,64], index: 1, kind: input, shape index: {}]   ;;  %s854_s2 = inlined_call_operand.vmem [shape: f32[8,1], index: 2, kind: input, shape index: {}]   ;;  %s855_s3 = inlined_call_operand.hbm [shape: f32[2,8,128], index: 3, kind: output, shape index: {}]  }
   0x1   :  { %10 = vsyncpa [#allocation3 + $0x1], 0 }
   0x2   :  { %11 = vsyncpa [#allocation4], 0 }
   0x3   :  { %13 = vsyncpa [#allocation4 + $0x1], 0  ;;  %s672_s12 = smov 0   ;;  %s674_s13 = smov 0  }
   0x4   :  { %s676_s14 = smov 0   ;;  %s678_s15 = smov 0  }
   0x5   :  { %s680_s16 = smov 0   ;;  %s682_s17 = smov 0  }
   0x6 LB: > { %s415_s18 = sadd.s32 4294967295, %s640_s17   ;;  %s416_s19 = sadd.s32 4294967294, %s640_s17   ;;  %s640_s17 = sphi %s682_s17, %s19_s17   ;;  %s636_s16 = sphi %s680_s16, %s870_s16   ;;  %s632_s15 = sphi %s678_s15, %s869_s15   ;;  %s628_s14 = sphi %s676_s14, %s868_s14   ;;  %s624_s13 = sphi %s674_s13, %s867_s13   ;;  %s620_s12 = sphi %s672_s12, %s866_s12  }
   0x7   : > { %s31_s20 = sadd.s32 1, %s636_s16  ;;  %s40_s21 = sadd.s32 1, %s628_s14 }
   0x8   : > { %p33_p0 = scmp.ge.s32.totalorder %s31_s20, 2  ;;  %p47_p1 = scmp.ne.s32.totalorder %s628_s14, %s624_s13 }
   0x9   : > { %p48_p2 = scmp.eq.s32.totalorder %s640_s17, 0  ;;  %p53_p3 = scmp.ne.s32.totalorder %s624_s13, %s620_s12 }
   0xa   : > { %s872_s20 = smov (%p33_p0, %s31_s20), 0  ;;  %p54_p5 = scmp.eq.s32.totalorder %s415_s18, 0 }
   0xb   : > { %p713_p4 = por %p48_p2, %p47_p1  ;;  %s35_s23 = ssub.s32 %s636_s16, %s872_s20 }
   0xc   : > { %p121_p6 = scmp.eq.s32.totalorder %s415_s18, 1  ;;  %p38_p7 = scmp.eq.s32.totalorder %s35_s23, 0 }
   0xd   : > { %p719_p8 = por %p54_p5, %p53_p3  ;;  %p127_p10 = scmp.eq.s32.totalorder %s416_s19, 1 }
   0xe   : > { %p723_p9 = por %p121_p6, %p47_p1  ;;  %p462_p13 = scmp.lt.s32.totalorder %s640_s17, 2 }
   0xf   : > { %s728_s26 = scalar_select %p38_p7, %s628_s14, %s40_s21  }
  0x10   : > { %s859_s25 = scalar_select %p723_p9, 1, 0 }
  0x11   : > { %p730_p11 = por %p127_p10, %p53_p3  ;;  %s153_s28 = sand.u32 1, %s628_s14  }
  0x12   : > { %s419_s29 = sshll.u32 %s153_s28, 4  ;;  %s432_s30 = sshll.u32 %s636_s16, 8 }
  0x13   : > { %s860_s27 = scalar_select %p730_p11, 1, 0 }
  0x14   : > { %s741_s6 = scalar_lea.hbm %s852_s0, %s432_s30  ;;  %s157_s7 = scalar_lea.vmem [#allocation2], %s419_s29 }
  0x15   : > { %s166_s8 = sshll.u32 %s157_s7, 4  ;;  %p747_p0 = pnand %p462_p13, %p713_p4  ;;  %s743_s8 = int_to_ptr.vmem [resolvable:$true] %s166_s8 }
  0x16   : > { %s752_s10 = scalar_lea.sflag [#allocation3], %s153_s28  ;;  %s528_s11 = scalar_lea.hbm %s741_s6, 256 }
  0x17   : > { %p529_p2 = scmp.ne.s32.totalorder %s741_s6, %s528_s11  ;;  %p530_p3 = pneg %p747_p0 }
  0x18   : > { %s533_s21 = scalar_lea.hbm %s852_s0, 512  ;;  %p534_p4 = scmp.lt.u32.totalorder %s741_s6, %s852_s0 }
  0x19   : > { %p531_p5 = pnand %p530_p3, %p529_p2  ;;  %p535_p7 = scmp.lt.u32.totalorder %s533_s21, %s528_s11 }
  0x1a   : > { %p537_p13 = scmp.lt.u32.totalorder %s528_s11, %s741_s6 }
  0x1b   : > { %p532_p6 = pneg %p531_p5  ;;  %p536_p10 = por %p535_p7, %p534_p4 }
  0x1d   : > { %p538_p12 = por %p537_p13, %p536_p10 }
  0x1f   : > { %p539_p1 = pnand %p538_p12, %p532_p6 }
  0x21   : > { %542 = shalt.err (!%p539_p1)
}
  0x22   : > { %s543_s28 = scalar_lea.vmem %s743_s8, 256  ;;  %s642_s29 = smov [#allocation2]  }
  0x23   : > { %p544_p2 = scmp.ne.s32.totalorder %s743_s8, %s543_s28  ;;  %s548_s30 = sshll.u32 %s642_s29, 4  ;;  %s549_s30 = int_to_ptr.vmem [resolvable:$false] %s548_s30 }
  0x24   : > { %s550_s4 = scalar_lea.vmem %s549_s30, 512  ;;  %p551_p9 = scmp.lt.s32.totalorder %s743_s8, %s549_s30 }
  0x25   : > { %p546_p5 = pnand %p544_p2, %p530_p3  ;;  %p552_p4 = scmp.lt.s32.totalorder %s550_s4, %s543_s28 }
  0x27   : > { %p547_p11 = pneg %p546_p5  ;;  %p553_p7 = por %p552_p4, %p551_p9 }
  0x29   : > { %p554_p10 = pnand %p553_p7, %p547_p11 }
  0x2b   : > { %557 = shalt.err (!%p554_p10)
}
  0x2c   : > { %s643_s5 = smov 128   ;;  %s644_s7 = smov 8  }
  0x2d   : > { %457 = dma.hbm_to_vmem [thread:$0]  (!%p747_p0), %s741_s6, 256, %s743_s8, %s752_s10, %s643_s5, %s643_s5, %s644_s7  }
  0x2e   : > { %p174_p12 = scmp.lt.s32.totalorder %s640_s17, 3  ;;  %p862_p1 = scmp.ge.s32.totalorder %s640_s17, 1 }
  0x30   : > { %p175_p3 = pnand %p862_p1, %p174_p12 }
  0x31   : > { %s784_s11 = sand.u32 (!%p175_p3), 1, %s624_s13  }
  0x32   : > { %178 = sbr.rel (%p175_p3) target bundleno = 467 (0x1d3), region = 32  ;;  %s423_s18 = sshll.u32 (!%p175_p3), %s784_s11, 4 }
  0x33   : > { %s181_s19 = scalar_lea.sflag (!%p175_p3), [#allocation3], %s784_s11  ;;  %s184_s21 = scalar_lea.vmem (!%p175_p3), [#allocation2], %s423_s18 }
  0x39   : > { %611 = dma.done.wait (%p719_p8), %s181_s19, 256  }
  0x3a   : > { %613 = vsyncadd (%p719_p8), %s181_s19, 4294967040  ;;  %v645_v0 = vmov 0.0   ;;  %v521_v1 = vld [vmem:[%s184_s21] ss:$8 sps:$4 sm:$0xff]   ;;  %s646_s6 = smov 119   ;;  %s647_s8 = smov 127  }
  0x3b   : > { %438 = vmatprep.subr.bf16.mxu0 %v645_v0  ;;  %226 = vrot.lane.b32.xlu1 %v521_v1, %s646_s6  ;;  %v523_v2 = vld [vmem:[%s184_s21 + $0x4] ss:$8 sps:$4 sm:$0xff]   ;;  %vm648_vm0 = vmmov 0   ;;  %v649_v3 = vmov 0   ;;  %s650_s9 = smov 118   ;;  %vm223_vm1 = vcmask 1039360  }
  0x3c   : > { %219 = vrot.lane.b32.xlu0 %v521_v1, %s647_s8  ;;  %439 = vmatpush3.bf16.msra.mxu0 %v521_v1  ;;  %v241_v4 = vld [vmem:[%s854_s2] sm:$0xff]  ;;  %vm230_vm2 = vcmask 973824   ;;  %vm237_vm3 = vcmask 965632   ;;  %vm247_vm4 = vcmask 523264   ;;  %s424_s28 = sshll.u32 %s784_s11, 3  ;;  %s429_s29 = sshll.u32 %s632_s15, 7 }
  0x3d   : > { %446 = vmatprep.mubr.msk.bf16.mxu0 %vm648_vm0, %v645_v0  ;;  %440 = vmatprep.subr.bf16.mxu0 %v645_v0  ;;  %v240_v14 = vld [vmem:[%s853_s1] sm:$0xf]  ;;  %s206_s30 = scalar_lea.vmem [#allocation5], %s424_s28  ;;  %s803_s18 = scalar_lea.hbm %s855_s3, %s429_s29 }
  0x3e   : > { %520 = vset.pattern.permute.xlu0 %v649_v3  ;;  %s333_s4 = sshll.u32 %s206_s30, 4  ;;  %s319_s19 = scalar_lea.sflag [#allocation4], %s784_s11  ;;  %s805_s4 = int_to_ptr.vmem [resolvable:$true] %s333_s4 }
  0x3f   : > { %228 = vrot.lane.b32.xlu1 %v523_v2, %s646_s6  ;;  %s558_s21 = scalar_lea.vmem %s805_s4, 128  ;;  %p863_p9 = scmp.ne.s32.totalorder %s859_s25, 0 }
  0x40   : > { %221 = vrot.lane.b32.xlu0 %v523_v2, %s647_s8  ;;  %p559_p8 = scmp.ne.s32.totalorder %s805_s4, %s558_s21  ;;  %s651_s15 = smov [#allocation5]  }
  0x41   : > { %s562_s6 = sshll.u32 %s651_s15, 4  ;;  %s563_s6 = int_to_ptr.vmem [resolvable:$false] %s562_s6 }
  0x42   : > { %p560_p11 = pnand %p559_p8, %p863_p9  ;;  %s564_s8 = scalar_lea.vmem %s563_s6, 256 }
  0x43   : > { %235 = vrot.lane.b32.xlu1 %v523_v2, %s650_s9  ;;  %p565_p6 = scmp.lt.s32.totalorder %s805_s4, %s563_s6  ;;  %p566_p13 = scmp.lt.s32.totalorder %s564_s8, %s558_s21 }
  0x44   : > { %233 = vrot.lane.b32.xlu0 %v521_v1, %s650_s9  ;;  %p561_p0 = pneg %p560_p11 }
  0x45   : > { %p567_p2 = por %p566_p13, %p565_p6 }
  0x47   : > { %p568_p5 = pnand %p567_p2, %p561_p0 }
  0x48   : > { %244 = vperm.xlu0 %520, %v241_v4  }
  0xad   : > { %v227_v5 = vpop.permute.xlu1 %226 }
  0xae   : > { %v220_v6 = vpop.permute.xlu0 %219 }
  0xb1   : > { %v229_v7 = vpop.permute.xlu1 %228 }
  0xb2   : > { %v222_v8 = vpop.permute.xlu0 %221  ;;  %v231_v12 = vsel %vm230_vm2, %v227_v5, %v229_v7 }
  0xb3   : > { %v224_v9 = vsel %vm223_vm1, %v220_v6, %v222_v8 }
  0xb4   : > { %441 = vmatpush3.bf16.msra.mxu0 %v224_v9 }
  0xb5   : > { %442 = vmatprep.subr.bf16.mxu0 %v645_v0  ;;  %v236_v10 = vpop.permute.xlu1 %235 }
  0xb6   : > { %v234_v11 = vpop.permute.xlu0 %233 }
  0xb7   : > { %v238_v13 = vsel %vm237_vm3, %v234_v11, %v236_v10 }
  0xb8   : > { %443 = vmatpush3.bf16.msra.mxu0 %v231_v12 }
  0xb9   : > { %444 = vmatprep.subr.bf16.mxu0 %v645_v0 }
  0xbc   : > { %445 = vmatpush3.bf16.msra.mxu0 %v238_v13 }
  0xbf   : > { %447 = vmatmul.mubr.msk.bf16.vlgmr.msra.gmra.mrb[0].mxu0 %vm247_vm4, %v240_v14 }
  0xc7   : > { %v245_v15 = vpop.permute.xlu0 %244 }
 0x192   : > { %v285_v16 = vpop.f32.mrb[0].mxu0 }
 0x193   : > { %v286_v17 = vadd.f32 %v285_v16, %v245_v15  ;;  %v448_v18 = vpop.f32.mrb[1].mxu0 }
 0x194   : > { %v288_v19 = vpop.f32.mrb[2].mxu0 }
 0x195   : > { %v291_v20 = vmul.f32 0.70710677, %v286_v17  ;;  %v449_v21 = vpop.f32.mrb[3].mxu0  ;;  %v314_v43 = vmul.f32 0.5, %v286_v17 }
 0x197   : > { %v292_v22 = vand.u32 2147483647, %v291_v20  ;;  %vm311_vm5 = vcmp.ge.f32.partialorder %v291_v20, 0.0 }
 0x199   : > { %v293_v23 = vmul.f32 0.3275911, %v292_v22  ;;  %v305_v25 = vsub.f32 0.0, %v292_v22 }
 0x19b   : > { %v294_v24 = vadd.f32 1.0, %v293_v23  ;;  %v306_v27 = vmul.f32 %v305_v25, %v292_v22 }
 0x19d   : > { %524 = vrcp.f32 %v294_v24  ;;  %v307_v30 = vmul.f32 1.442695, %v306_v27 }
 0x19f   : > { %526 = vpow2.f32 %v307_v30 }
 0x1a7   : > { %v525_v26 = vpop.eup %524 }
 0x1a8   : > { %v296_v28 = vmul.f32 1.0614054, %v525_v26 }
 0x1a9   : > { %v527_v38 = vpop.eup %526 }
 0x1aa   : > { %v297_v29 = vadd.f32 -1.4531521, %v296_v28 }
 0x1ac   : > { %v298_v31 = vmul.f32 %v525_v26, %v297_v29 }
 0x1ae   : > { %v299_v32 = vadd.f32 1.4214138, %v298_v31 }
 0x1b0   : > { %v300_v33 = vmul.f32 %v525_v26, %v299_v32 }
 0x1b2   : > { %v301_v34 = vadd.f32 -0.28449672, %v300_v33 }
 0x1b4   : > { %v302_v35 = vmul.f32 %v525_v26, %v301_v34 }
 0x1b6   : > { %v303_v36 = vadd.f32 0.2548296, %v302_v35 }
 0x1b8   : > { %v304_v37 = vmul.f32 %v525_v26, %v303_v36 }
 0x1ba   : > { %v309_v39 = vmul.f32 %v527_v38, %v304_v37 }
 0x1bc   : > { %v310_v40 = vsub.f32 1.0, %v309_v39 }
 0x1be   : > { %v312_v41 = vsub.f32 0.0, %v310_v40 }
 0x1c0   : > { %v313_v42 = vsel %vm311_vm5, %v310_v40, %v312_v41 }
 0x1c1   : > { %v315_v44 = vadd.f32 1.0, %v313_v42 }
 0x1c3   : > { %v316_v45 = vmul.f32 %v315_v44, %v314_v43 }
 0x1c5   : > { %317 = vst [vmem:[%s206_s30] sm:$0xff] %v316_v45 }
 0x1c6   : > { %571 = shalt.err (!%p568_p5)
}
 0x1c7   : > { %s572_s11 = scalar_lea.hbm %s803_s18, 128  ;;  %s576_s10 = scalar_lea.hbm %s855_s3, 256 }
 0x1c8   : > { %p573_p4 = scmp.ne.s32.totalorder %s803_s18, %s572_s11  ;;  %p577_p12 = scmp.lt.u32.totalorder %s803_s18, %s855_s3 }
 0x1c9   : > { %p578_p1 = scmp.lt.u32.totalorder %s576_s10, %s572_s11  ;;  %p580_p8 = scmp.lt.u32.totalorder %s572_s11, %s803_s18 }
 0x1ca   : > { %p574_p7 = pnand %p573_p4, %p863_p9 }
 0x1cb   : > { %p579_p3 = por %p578_p1, %p577_p12 }
 0x1cc   : > { %p575_p10 = pneg %p574_p7 }
 0x1cd   : > { %p581_p11 = por %p580_p8, %p579_p3 }
 0x1cf   : > { %p582_p0 = pnand %p581_p11, %p575_p10 }
 0x1d1   : > { %585 = shalt.err (!%p582_p0)
}
 0x1d2   : > { %452 = dma.vmem_to_hbm [thread:$0]  (%p863_p9), %s805_s4, 128, %s803_s18, %s319_s19  }
 0x1d3 PF: > { %s345_s28 = sand.u32 1, %s620_s12   ;;  %p864_p6 = scmp.ne.s32.totalorder %s860_s27, 0 }
 0x1d4   : > { %p865_p13 = scmp.ge.s32.totalorder %s640_s17, 2  ;;  %s346_s29 = scalar_lea.sflag [#allocation4], %s345_s28 }
 0x1d6   : > { %p459_p2 = pnand %p865_p13, %p864_p6 }
 0x1d8   : > { %615 = dma.done.wait (!%p459_p2), %s346_s29, 128  }
 0x1d9   : > { %617 = vsyncadd (!%p459_p2), %s346_s29, 4294967168  ;;  %s19_s17 = sadd.s32 1, %s640_s17   ;;  %s866_s12 = smov %s624_s13 }
 0x1da   : > { %p16_p5 = scmp.ge.s32.totalorder %s19_s17, 4   ;;  %s867_s13 = smov %s628_s14 }
 0x1db   : > { %s868_s14 = smov %s728_s26  ;;  %s869_s15 = smov %s636_s16 }
 0x1dc   : > { %s870_s16 = smov %s872_s20  ;;  %18 = sbr.rel (!%p16_p5) target bundleno = 6 (0x6), region = 77 }
 0x1e3   :  { %351 = vsyncpa [#allocation3], 1 }
 0x1e4   :  { %353 = vsyncpa [#allocation3 + $0x1], 1 }
 0x1e5   :  { %354 = vsyncpa [#allocation4], 1 }
 0x1e6   :  { %356 = vsyncpa [#allocation4 + $0x1], 1 }

</bundles_post_ra>
